<compile_context>
chip_gen: v5e
topology: v5e:2x2
jax: 0.10.0
libtpu: 0.0.40
codegen_flags: <defaults>
</compile_context>

<pallas_src>
import functools

import numpy as np
import jax
import jax.numpy as jnp
from jax import lax
from jax.experimental import pallas as pl
from jax.experimental.pallas import tpu as pltpu


# ------------------------------ Pallas kernel --------------------------------

def _clf_fused_kernel(d_ref, e_ref, masks_ref, ind_ref, indt_ref,
                      w_ref, b_ref, gmat_ref, gbias_ref, o_ref, *, w2, inv_p):
    """Fused sub-pixel ConvTranspose + SE gate + residual, single invocation.

    Layout: channels (phase-blocked) on sublanes, batch*pixels on lanes.
      d_ref    : (Cin,        L) bf16  decoder feature, L = B*h2*w2
      e_ref    : (4*Cout,     L) bf16  encoder feature, phase-blocked
      masks_ref: (2,          L) f32   [n != 0 ; m != 0] border masks
      ind_ref  : (L,          B) f32   batch block-indicator (per-batch sums)
      indt_ref : (B,          L) f32   its transpose (gate lane-broadcast)
      w_ref    : (4*Cout, 4*Cin) bf16  phase-stacked transposed-conv weight
      b_ref    : (4*Cout,     1) f32   transposed-conv bias (tiled over phases)
      gmat_ref : (4*Cout, 4*Cin + 4*Cout) f32  folded SE weight [g1@W_all | g2]
      gbias_ref: (4*Cout,     1) f32   folded SE bias
      o_ref    : (4*Cout,     L) f32   output, phase-blocked
    """
    # --- 2x2-neighborhood patches of d, built in VMEM (no im2col HBM copy).
    # Taps d[m,n], d[m,n-1], d[m-1,n], d[m-1,n-1] are lane rolls of the flat
    # (b, m, n) layout; out-of-range taps are zeroed by the border masks (the
    # rolled-in wrap-around values land exactly on masked lanes).
    d0 = d_ref[...].astype(jnp.float32)                        # (Cin, L)
    m_n = masks_ref[0:1, :]                                    # n != 0
    m_m = masks_ref[1:2, :]                                    # m != 0
    d1 = pltpu.roll(d0, shift=1, axis=1) * m_n                 # d[m,   n-1]
    d2 = pltpu.roll(d0, shift=w2, axis=1) * m_m                # d[m-1, n  ]
    d3 = pltpu.roll(d0, shift=w2 + 1, axis=1) * (m_n * m_m)    # d[m-1, n-1]
    patches = jnp.concatenate([d0, d1, d2, d3], axis=0)        # (4*Cin, L) f32

    # --- ConvTranspose2d as ONE lane-dense bf16 MXU matmul (f32 accumulate).
    up = jnp.dot(w_ref[...], patches.astype(jnp.bfloat16),
                 preferred_element_type=jnp.float32) + b_ref[...]   # (4Cout, L)

    # --- SE gate, decoupled from `up`: only per-batch channel sums of patches
    # and e are needed (1x1 conv hoisted through the mean and the conv).
    e_f32 = e_ref[...].astype(jnp.float32)                     # (4*Cout, L)
    cat = jnp.concatenate([patches, e_f32], axis=0)            # (4Cin+4Cout, L)
    sums = jnp.dot(cat, ind_ref[...],
                   preferred_element_type=jnp.float32)         # (4Cin+4Cout, B)
    t = (jnp.dot(gmat_ref[...], sums, preferred_element_type=jnp.float32)
         * inv_p + gbias_ref[...])                             # (4*Cout, B)
    gate = jax.nn.sigmoid(t)                                   # (4*Cout, B)
    gate_l = jnp.dot(gate, indt_ref[...],
                     preferred_element_type=jnp.float32)       # (4*Cout, L)

    # --- se(cat) * e + up, stored lane-dense in f32.
    o_ref[...] = gate_l * e_f32 + up


def _clf_fused_pallas(d_flat, e_pb, masks, ind, indt, prep, *, inv_p, w2):
    C4, L = e_pb.shape
    B = ind.shape[1]
    K4 = d_flat.shape[0] * 4

    args = (d_flat, e_pb, masks, ind, indt,
            prep["w_all"], prep["b_all"], prep["gmat"], prep["gbias"])
    flops = int(2 * C4 * K4 * L          # up matmul
                + 2 * (K4 + C4) * L * B  # per-batch sums
                + 2 * C4 * (K4 + C4) * B  # gate matvec
                + 2 * C4 * B * L         # gate lane-broadcast
                + 8 * C4 * L)            # patch build + epilogue
    bytes_accessed = int(sum(int(np.prod(a.shape)) * a.dtype.itemsize
                             for a in args) + 4 * C4 * L)

    # TODO(synk): for large feature maps, tile the lane axis with a second
    #             ("arbitrary") grid dim, accumulate the SE sums in VMEM
    #             scratch and finalize via pl.when on the last tile; size the
    #             tiles for v7x's 64 MiB VMEM and mark the tile axis
    #             CORE_PARALLEL there (single tile fits easily here).
    kernel = functools.partial(_clf_fused_kernel, w2=w2, inv_p=inv_p)
    vmem_spec = pl.BlockSpec(memory_space=pltpu.MemorySpace.VMEM)
    return pl.pallas_call(
        kernel,
        out_shape=jax.ShapeDtypeStruct((C4, L), jnp.float32),
        in_specs=[vmem_spec] * len(args),
        out_specs=vmem_spec,
        cost_estimate=pl.CostEstimate(flops=flops, transcendentals=C4 * B,
                                      bytes_accessed=bytes_accessed),
    )(*args)


# ------------------------- one-time parameter prep ---------------------------

def prepare_clf_params(params):
    """Fold all weight flips/reshapes/SE hoisting into kernel-ready constants."""
    wt = params["up_w"].astype(jnp.float32)     # (Cin, Cout, 3, 3)
    bt = params["up_b"].astype(jnp.float32)     # (Cout,)
    wse = params["se_w"].astype(jnp.float32)    # (Cout, 2*Cout, 1, 1)
    bse = params["se_b"].astype(jnp.float32)    # (Cout,)
    Cin, Cout = wt.shape[0], wt.shape[1]

    # Sub-pixel decomposition of ConvTranspose2d(3, stride=2): output phase
    # (py, px) at sub-pixel (m, n) reads d at offsets {(0,0),(0,-1),(-1,0),
    # (-1,-1)}; the kernel tap is (ky, kx) = (py - 2r, px - 2c), zero if it
    # falls outside the 3x3 kernel.
    taps = [(0, 0), (0, -1), (-1, 0), (-1, -1)]
    phase_rows = []
    for py in range(2):
        for px in range(2):
            blocks = []
            for (r, c) in taps:
                ky, kx = py - 2 * r, px - 2 * c
                if ky <= 2 and kx <= 2:
                    blocks.append(wt[:, :, ky, kx].T)                # (Cout, Cin)
                else:
                    blocks.append(jnp.zeros((Cout, Cin), jnp.float32))
            phase_rows.append(jnp.concatenate(blocks, axis=1))       # (Cout, 4*Cin)
    w_all = jnp.concatenate(phase_rows, axis=0)                      # (4Cout, 4Cin)
    b_all = jnp.tile(bt, 4).reshape(4 * Cout, 1)                     # (4Cout, 1)

    # SE 1x1 conv hoisted through AdaptiveAvgPool2d(1) (linear) and through the
    # transposed conv (linear): phase-sum matrix F0 and phase-broadcast E=F0^T
    # are pre-applied, the `up` half is pushed through W_all and the conv bias,
    # so the in-kernel gate path is a single (4C, 4Cin+4C) @ (., B) matmul.
    wse_up = wse[:, :Cout, 0, 0]                                     # (Cout, Cout)
    wse_e = wse[:, Cout:, 0, 0]                                      # (Cout, Cout)
    f0 = jnp.tile(jnp.eye(Cout, dtype=jnp.float32), (1, 4))          # (Cout, 4Cout)
    e_exp = f0.T                                                     # (4Cout, Cout)
    g1 = e_exp @ wse_up @ f0                                         # (4Cout, 4Cout)
    g2 = e_exp @ wse_e @ f0                                          # (4Cout, 4Cout)
    bse_rows = jnp.tile(bse, 4).reshape(4 * Cout, 1)
    # sum_pixels(up) = W_all @ sum_pixels(patches) + Pq*b_all, and for the
    # even-size crop branch of pad2same Pq/(he*we) == 1/4 exactly.
    gmat = jnp.concatenate([g1 @ w_all, g2], axis=1)                 # (4C, 4Cin+4C)
    gbias = bse_rows + 0.25 * (g1 @ b_all)                           # (4Cout, 1)

    return {
        "w_all": w_all.astype(jnp.bfloat16),
        "b_all": b_all,
        "gmat": gmat,
        "gbias": gbias,
    }


# -------------------------------- CLF forward --------------------------------

@jax.jit
def clf_forward(e_nchw, d_nchw, prep):
    B, Cout, he, we = e_nchw.shape
    _, Cin, hd, wd = d_nchw.shape
    # pad2same: crop branch only (even output, skip at <= 2x decoder size).
    assert he % 2 == 0 and we % 2 == 0
    assert he <= 2 * hd and we <= 2 * wd
    # TODO(synk): support the zero-pad branch of pad2same (he > 2*hd + 1) and
    #             odd output sizes.
    h2, w2 = he // 2, we // 2
    pq = h2 * w2
    L = B * pq

    # d in (Cin, B*Pq) channels-on-sublanes / batch*pixels-on-lanes layout; the
    # 2x2-neighborhood patches are built inside the kernel (no im2col in HBM).
    d_flat = jnp.transpose(d_nchw[:, :, :h2, :w2],
                           (1, 0, 2, 3)).reshape(Cin, L).astype(jnp.bfloat16)

    # e in phase-blocked (space_to_depth) layout with B folded into lanes.
    # TODO(synk): fuse this relayout and the inverse depth_to_space below into
    #             the kernel (strided phase writes); they remain cheap
    #             wrapper-side XLA transposes here.
    e_pb = jnp.transpose(e_nchw.reshape(B, Cout, h2, 2, w2, 2),
                         (3, 5, 1, 0, 2, 4)).reshape(4 * Cout, L)
    e_pb = e_pb.astype(jnp.bfloat16)

    # Constant lane tables: border masks for the in-kernel patch rolls and the
    # batch block-indicator for per-batch SE means / gate lane-broadcast.
    p = np.arange(L)
    masks = jnp.asarray(np.stack([(p % w2) != 0,
                                  ((p % pq) // w2) != 0]).astype(np.float32))
    ind_np = (p[:, None] // pq == np.arange(B)[None, :]).astype(np.float32)
    ind = jnp.asarray(ind_np)                                     # (L, B)
    indt = jnp.asarray(np.ascontiguousarray(ind_np.T))            # (B, L)

    out_pb = _clf_fused_pallas(d_flat, e_pb, masks, ind, indt, prep,
                               inv_p=1.0 / (he * we), w2=w2)

    # depth_to_space back to NCHW.
    out = jnp.transpose(out_pb.reshape(2, 2, Cout, B, h2, w2),
                        (3, 2, 4, 0, 5, 1)).reshape(B, Cout, he, we)
    return out


# ----------------------------- pure-JAX reference ----------------------------

def clf_reference(e, d, params):
    wt, bt, wse, bse = params["up_w"], params["up_b"], params["se_w"], params["se_b"]
    he, we = e.shape[2], e.shape[3]
    rhs = jnp.transpose(jnp.flip(wt, axis=(2, 3)), (1, 0, 2, 3))  # (Cout,Cin,3,3)
    up = lax.conv_general_dilated(
        d, rhs, window_strides=(1, 1), padding=((2, 2), (2, 2)),
        lhs_dilation=(2, 2), dimension_numbers=("NCHW", "OIHW", "NCHW"),
    ) + bt[None, :, None, None]
    up = up[:, :, :min(up.shape[2], he), :min(up.shape[3], we)]
    up = jnp.pad(up, ((0, 0), (0, 0),
                      (0, max(0, he - up.shape[2])),
                      (0, max(0, we - up.shape[3]))))
    cat = jnp.concatenate([up, e], axis=1)
    t = jnp.einsum("bchw,oc->bohw", cat, wse[:, :, 0, 0]) + bse[None, :, None, None]
    s = jax.nn.sigmoid(jnp.mean(t, axis=(2, 3), keepdims=True))
    return s * e + up


# ------------------------------------ main ------------------------------------

if __name__ == "__main__":
    in_channels, out_channels = 8, 4
    B, hd, wd = 2, 8, 8          # decoder feature d: (B, Cin, 8, 8)
    he, we = 16, 16              # encoder feature e: (B, Cout, 16, 16)

    key = jax.random.PRNGKey(0)
    k1, k2, k3, k4, k5, k6 = jax.random.split(key, 6)
    params = {
        "up_w": 0.1 * jax.random.normal(k1, (in_channels, out_channels, 3, 3), jnp.float32),
        "up_b": 0.1 * jax.random.normal(k2, (out_channels,), jnp.float32),
        "se_w": 0.1 * jax.random.normal(k3, (out_channels, 2 * out_channels, 1, 1), jnp.float32),
        "se_b": 0.1 * jax.random.normal(k4, (out_channels,), jnp.float32),
    }
    e = jax.random.normal(k5, (B, out_channels, he, we), jnp.float32)
    d = jax.random.normal(k6, (B, in_channels, hd, wd), jnp.float32)

    prep = prepare_clf_params(params)
    out = jax.block_until_ready(clf_forward(e, d, prep))
    ref = clf_reference(e, d, params)

    assert out.shape == (B, out_channels, he, we)
    # bf16 data path with f32 accumulation -> slightly looser tolerance than f32.
    np.testing.assert_allclose(np.asarray(out), np.asarray(ref),
                               atol=3e-2, rtol=1e-2)
    print("KERNEL_OK")
</pallas_src>

<mosaic_0001>
module attributes {stable_mosaic.version = 11 : i64} {
  func.func @_clf_fused_kernel(%arg0: memref<8x128xbf16, #tpu.memory_space<vmem>>, %arg1: memref<16x128xbf16, #tpu.memory_space<vmem>>, %arg2: memref<2x128xf32, #tpu.memory_space<vmem>>, %arg3: memref<128x2xf32, #tpu.memory_space<vmem>>, %arg4: memref<2x128xf32, #tpu.memory_space<vmem>>, %arg5: memref<16x32xbf16, #tpu.memory_space<vmem>>, %arg6: memref<16x1xf32, #tpu.memory_space<vmem>>, %arg7: memref<16x48xf32, #tpu.memory_space<vmem>>, %arg8: memref<16x1xf32, #tpu.memory_space<vmem>>, %arg9: memref<16x128xf32, #tpu.memory_space<vmem>>) attributes {dimension_semantics = [], scalar_prefetch = 0 : i64, scratch_operands = 0 : i64, tpu.core_type = #tpu.core_type<tc>} {
    %c0 = arith.constant 0 : index
    %c0_0 = arith.constant 0 : index
    %0 = vector.load %arg0[%c0, %c0_0] : memref<8x128xbf16, #tpu.memory_space<vmem>>, vector<8x128xbf16>
    %1 = arith.extf %0 : vector<8x128xbf16> to vector<8x128xf32>
    %c0_1 = arith.constant 0 : index
    %c0_2 = arith.constant 0 : index
    %2 = vector.load %arg2[%c0_1, %c0_2] : memref<2x128xf32, #tpu.memory_space<vmem>>, vector<1x128xf32>
    %c1 = arith.constant 1 : index
    %c0_3 = arith.constant 0 : index
    %3 = vector.load %arg2[%c1, %c0_3] : memref<2x128xf32, #tpu.memory_space<vmem>>, vector<1x128xf32>
    %c1_i32 = arith.constant 1 : i32
    %4 = tpu.dynamic_rotate %1 by %c1_i32 dim 1 : vector<8x128xf32>, i32 -> vector<8x128xf32>
    %5 = vector.broadcast %2 : vector<1x128xf32> to vector<8x128xf32>
    %6 = arith.mulf %4, %5 : vector<8x128xf32>
    %c8_i32 = arith.constant 8 : i32
    %7 = tpu.dynamic_rotate %1 by %c8_i32 dim 1 : vector<8x128xf32>, i32 -> vector<8x128xf32>
    %8 = vector.broadcast %3 : vector<1x128xf32> to vector<8x128xf32>
    %9 = arith.mulf %7, %8 : vector<8x128xf32>
    %c9_i32 = arith.constant 9 : i32
    %10 = tpu.dynamic_rotate %1 by %c9_i32 dim 1 : vector<8x128xf32>, i32 -> vector<8x128xf32>
    %11 = arith.mulf %2, %3 : vector<1x128xf32>
    %12 = vector.broadcast %11 : vector<1x128xf32> to vector<8x128xf32>
    %13 = arith.mulf %10, %12 : vector<8x128xf32>
    %14 = tpu.concatenate %1, %6, %9, %13 in 0 : vector<8x128xf32>, vector<8x128xf32>, vector<8x128xf32>, vector<8x128xf32> -> vector<32x128xf32>
    %c0_4 = arith.constant 0 : index
    %c0_5 = arith.constant 0 : index
    %15 = vector.load %arg5[%c0_4, %c0_5] : memref<16x32xbf16, #tpu.memory_space<vmem>>, vector<16x32xbf16>
    %16 = arith.truncf %14 : vector<32x128xf32> to vector<32x128xbf16>
    %cst = arith.constant dense<0.000000e+00> : vector<16x128xf32>
    %17 = tpu.matmul %15, %16, %cst {dimension_numbers = #tpu.dot_dimension_numbers<[1], [0], [0], [1], [0, 0, 1, 1], [], []>} : vector<16x32xbf16>, vector<32x128xbf16>, vector<16x128xf32> -> vector<16x128xf32>
    %c0_6 = arith.constant 0 : index
    %c0_7 = arith.constant 0 : index
    %18 = vector.load %arg6[%c0_6, %c0_7] : memref<16x1xf32, #tpu.memory_space<vmem>>, vector<16x1xf32>
    %19 = vector.broadcast %18 : vector<16x1xf32> to vector<16x128xf32>
    %20 = arith.addf %17, %19 : vector<16x128xf32>
    %c0_8 = arith.constant 0 : index
    %c0_9 = arith.constant 0 : index
    %21 = vector.load %arg1[%c0_8, %c0_9] : memref<16x128xbf16, #tpu.memory_space<vmem>>, vector<16x128xbf16>
    %22 = arith.extf %21 : vector<16x128xbf16> to vector<16x128xf32>
    %23 = tpu.concatenate %14, %22 in 0 : vector<32x128xf32>, vector<16x128xf32> -> vector<48x128xf32>
    %c0_10 = arith.constant 0 : index
    %c0_11 = arith.constant 0 : index
    %24 = vector.load %arg3[%c0_10, %c0_11] : memref<128x2xf32, #tpu.memory_space<vmem>>, vector<128x2xf32>
    %cst_12 = arith.constant dense<0.000000e+00> : vector<48x2xf32>
    %25 = tpu.matmul %23, %24, %cst_12 {dimension_numbers = #tpu.dot_dimension_numbers<[1], [0], [0], [1], [0, 0, 1, 1], [], []>} : vector<48x128xf32>, vector<128x2xf32>, vector<48x2xf32> -> vector<48x2xf32>
    %c0_13 = arith.constant 0 : index
    %c0_14 = arith.constant 0 : index
    %26 = vector.load %arg7[%c0_13, %c0_14] : memref<16x48xf32, #tpu.memory_space<vmem>>, vector<16x48xf32>
    %cst_15 = arith.constant dense<0.000000e+00> : vector<16x2xf32>
    %27 = tpu.matmul %26, %25, %cst_15 {dimension_numbers = #tpu.dot_dimension_numbers<[1], [0], [0], [1], [0, 0, 1, 1], [], []>} : vector<16x48xf32>, vector<48x2xf32>, vector<16x2xf32> -> vector<16x2xf32>
    %cst_16 = arith.constant 3.906250e-03 : f32
    %28 = vector.broadcast %cst_16 : f32 to vector<16x2xf32>
    %29 = arith.mulf %27, %28 : vector<16x2xf32>
    %c0_17 = arith.constant 0 : index
    %c0_18 = arith.constant 0 : index
    %30 = vector.load %arg8[%c0_17, %c0_18] : memref<16x1xf32, #tpu.memory_space<vmem>>, vector<16x1xf32>
    %31 = vector.broadcast %30 : vector<16x1xf32> to vector<16x2xf32>
    %32 = arith.addf %29, %31 : vector<16x2xf32>
    %33 = arith.negf %32 : vector<16x2xf32>
    %34 = math.exp %33 : vector<16x2xf32>
    %cst_19 = arith.constant 1.000000e+00 : f32
    %35 = vector.broadcast %cst_19 : f32 to vector<16x2xf32>
    %36 = arith.addf %35, %34 : vector<16x2xf32>
    %37 = arith.divf %35, %36 : vector<16x2xf32>
    %c0_20 = arith.constant 0 : index
    %c0_21 = arith.constant 0 : index
    %38 = vector.load %arg4[%c0_20, %c0_21] : memref<2x128xf32, #tpu.memory_space<vmem>>, vector<2x128xf32>
    %cst_22 = arith.constant dense<0.000000e+00> : vector<16x128xf32>
    %39 = tpu.matmul %37, %38, %cst_22 {dimension_numbers = #tpu.dot_dimension_numbers<[1], [0], [0], [1], [0, 0, 1, 1], [], []>} : vector<16x2xf32>, vector<2x128xf32>, vector<16x128xf32> -> vector<16x128xf32>
    %40 = arith.mulf %39, %22 : vector<16x128xf32>
    %41 = arith.addf %40, %20 : vector<16x128xf32>
    %c0_23 = arith.constant 0 : index
    %c0_24 = arith.constant 0 : index
    %42 = vector.load %arg9[%c0_23, %c0_24] : memref<16x128xf32, #tpu.memory_space<vmem>>, vector<16x128xf32>
    tpu.vector_store %arg9[%c0_23, %c0_24], %41 {strides = array<i32>} : memref<16x128xf32, #tpu.memory_space<vmem>>, vector<16x128xf32>,
    return
  }
}

</mosaic_0001>

<bundles_post_ra>
// kernel: clf_forward.1
= control target key start
LH: loop header
LB: loop body
LE: loop exit
PB: predicated region body
PF: predicated region fallthrough
CT: control target
= control target key end

     0   :  { %s309_s15 = smov 1   ;;  %s310_s16 = smov 9   ;;  %vm71_vm0 = vcmask 261120   ;;  %v312_v42 = vmov 0   ;;  %vm146_vm1 = vcmask 392192   ;;  %vm238_vm2 = vcmask 1041408   ;;  %s473_s0 = inlined_call_operand.vmem [shape: bf16[8,128], index: 0, kind: input, shape index: {}]   ;;  %s474_s3 = inlined_call_operand.vmem [shape: f32[128,2], index: 3, kind: input, shape index: {}]   ;;  %s475_s2 = inlined_call_operand.vmem [shape: f32[2,128], index: 2, kind: input, shape index: {}]   ;;  %s476_s1 = inlined_call_operand.vmem [shape: bf16[16,128], index: 1, kind: input, shape index: {}]   ;;  %s477_s5 = inlined_call_operand.vmem [shape: bf16[16,32], index: 5, kind: input, shape index: {}]   ;;  %s478_s8 = inlined_call_operand.vmem [shape: f32[16,1], index: 8, kind: input, shape index: {}]   ;;  %s479_s6 = inlined_call_operand.vmem [shape: f32[16,1], index: 6, kind: input, shape index: {}]   ;;  %s480_s7 = inlined_call_operand.vmem [shape: f32[16,48], index: 7, kind: input, shape index: {}]   ;;  %s481_s4 = inlined_call_operand.vmem [shape: f32[2,128], index: 4, kind: input, shape index: {}]   ;;  %s482_s9 = inlined_call_operand.vmem [shape: f32[16,128], index: 9, kind: output, shape index: {}]  }
   0x1   :  { %v33_v0 = vld [vmem:[%s473_s0] sm:$0xf]  ;;  %v108_v1 = vld [vmem:[%s474_s3 + $0x78] sm:$0xff]  ;;  %v107_v3 = vld [vmem:[%s474_s3 + $0x70] sm:$0xff]  ;;  %s311_s24 = smov 8   ;;  %296 = vset.pattern.permute.xlu1 %v312_v42  ;;  %297 = vset.pattern.permute.xlu2 %v312_v42  ;;  %vm231_vm6 = vcmask 15360  }
   0x2   :  { %v34_v2 = vunpack.c.l.bf16 %v33_v0  ;;  %109 = vmatpush.msra.mxu1 %v108_v1  ;;  %v106_v4 = vld [vmem:[%s474_s3 + $0x68] sm:$0xff]  ;;  %v105_v5 = vld [vmem:[%s474_s3 + $0x60] sm:$0xff]  ;;  %v104_v6 = vld [vmem:[%s474_s3 + $0x58] sm:$0xff]  ;;  %298 = vset.pattern.permute.xlu0 %v312_v42 }
   0x3   :  { %v103_v7 = vld [vmem:[%s474_s3 + $0x50] sm:$0xff]  ;;  %v102_v8 = vld [vmem:[%s474_s3 + $0x48] sm:$0xff]  ;;  %v101_v9 = vld [vmem:[%s474_s3 + $0x40] sm:$0xff] }
   0x4   :  { %37 = vrot.lane.b32.xlu0 %v34_v2, %s309_s15  ;;  %45 = vrot.lane.b32.xlu1 %v34_v2, %s310_s16  ;;  %v100_v10 = vld [vmem:[%s474_s3 + $0x38] sm:$0xff]  ;;  %v99_v11 = vld [vmem:[%s474_s3 + $0x30] sm:$0xff] }
   0x5   :  { %110 = vmatpush.msra.mxu1 %v107_v3  ;;  %v98_v12 = vld [vmem:[%s474_s3 + $0x28] sm:$0xff]  ;;  %v97_v13 = vld [vmem:[%s474_s3 + $0x20] sm:$0xff]  ;;  %v96_v14 = vld [vmem:[%s474_s3 + $0x18] sm:$0xff] }
   0x6   :  { %v95_v15 = vld [vmem:[%s474_s3 + $0x10] sm:$0xff]  ;;  %v94_v16 = vld [vmem:[%s474_s3 + $0x8] sm:$0xff]  ;;  %v93_v17 = vld [vmem:[%s474_s3] sm:$0xff] }
   0x7   :  { %111 = vmatpush.msra.mxu1 %v106_v4  ;;  %v35_v18 = vld [vmem:[%s475_s2] sm:$0x1]  ;;  %v36_v19 = vld [vmem:[%s475_s2 + $0x1] sm:$0x1]  ;;  %v179_v41 = vld [vmem:[%s478_s8 + $0x8] sm:$0xff] }
   0x8   :  { %v299_v20 = vld [vmem:[%s475_s2] ss:$0 sm:$0xff]  ;;  %v47_v21 = vmul.f32 %v36_v19, %v35_v18  ;;  %v300_v26 = vld [vmem:[%s475_s2 + $0x1] ss:$0 sm:$0xff]  ;;  %187 = vperm.xlu2 %297, %v179_v41   ;;  %v145_v47 = vld [vmem:[%s480_s7 + $0x8] sm:$0xff] }
   0x9   :  { %112 = vmatpush.msra.mxu1 %v105_v5  ;;  %v429_v32 = vld [vmem:[%s476_s1] sm:$0xff]   ;;  %v55_v56 = vld [vmem:[%s479_s6 + $0x8] sm:$0xff] }
   0xa   :  { %v48_v24 = vperm.slane %v47_v21, 0  ;;  %v290_v33 = vunpack.c.l.bf16 %v429_v32  ;;  %v291_v34 = vunpack.c.h.bf16 %v429_v32  ;;  %v287_v39 = vld [vmem:[%s477_s5] sm:$0xff] }
   0xb   :  { %113 = vmatpush.msra.mxu1 %v104_v6  ;;  %v178_v40 = vld [vmem:[%s478_s8] sm:$0xff] }
   0xc   :  { %41 = vrot.lane.b32.xlu0 %v34_v2, %s311_s24  ;;  %182 = vperm.xlu1 %296, %v178_v40   ;;  %v54_v44 = vld [vmem:[%s479_s6] sm:$0xff] }
   0xd   :  { %114 = vmatpush.msra.mxu1 %v103_v7  ;;  %v144_v46 = vld [vmem:[%s480_s7] sm:$0xff] }
   0xe   :  { %v230_v48 = vld [vmem:[%s481_s4] sm:$0x3] }
   0xf   :  { %115 = vmatpush.msra.mxu1 %v102_v8  ;;  %284 = vmatpush.msk.msra.mxu3 %vm238_vm2, %v230_v48 }
  0x10   :  { %58 = vperm.xlu2 %297, %v54_v44  }
  0x11   :  { %116 = vmatpush.msra.mxu1 %v101_v9 }
  0x13   :  { %117 = vmatpush.msra.mxu1 %v100_v10 }
  0x14   :  { %63 = vperm.xlu0 %298, %v55_v56  }
  0x15   :  { %118 = vmatpush.msra.mxu1 %v99_v11 }
  0x17   :  { %119 = vmatpush.msra.mxu1 %v98_v12 }
  0x19   :  { %120 = vmatpush.msra.mxu1 %v97_v13 }
  0x1b   :  { %121 = vmatpush.msra.mxu1 %v96_v14 }
  0x1d   :  { %122 = vmatpush.msra.mxu1 %v95_v15 }
  0x1f   :  { %123 = vmatpush.msra.mxu1 %v94_v16 }
  0x21   :  { %124 = vmatpush.msra.mxu1 %v93_v17 }
  0x22   :  { %125 = vmatmul.f32.vlgmr.msra.gmra.mxu1 %v34_v2 }
  0x62   :  { %v188_v57 = vpop.permute.xlu2 %187 }
  0x76   :  { %v38_v22 = vpop.permute.xlu0 %37  ;;  %v46_v25 = vpop.permute.xlu1 %45 }
  0x77   :  { %v40_v23 = vmul.f32 %v299_v20, %v38_v22  ;;  %v49_v27 = vmul.f32 %v48_v24, %v46_v25  ;;  %v59_v20 = vpop.permute.xlu2 %58 }
  0x79   :  { %128 = vmatmul.f32.gmra.mxu1 %v40_v23  ;;  %v52_v31 = vpack.c.bf16 %v40_v23, %v34_v2 }
  0x7e   :  { %v42_v28 = vpop.permute.xlu0 %41  ;;  %v183_v50 = vpop.permute.xlu1 %182 }
  0x7f   :  { %v44_v29 = vmul.f32 %v300_v26, %v42_v28 }
  0x81   :  { %131 = vmatmul.f32.gmra.mxu1 %v44_v29  ;;  %v53_v30 = vpack.c.bf16 %v49_v27, %v44_v29 }
  0x83   :  { %81 = vmatpush.bf16.msra.mxu0 %v53_v30 }
  0x87   :  { %82 = vmatpush.bf16.msra.mxu0 %v52_v31 }
  0x89   :  { %134 = vmatmul.f32.gmra.mxu1 %v49_v27  ;;  %v64_v27 = vpop.permute.xlu0 %63 }
  0x8a   :  { %279 = vmatmul.msk.bf16.vlgmr.msra.gmra.mxu0 %vm71_vm0, %v287_v39 }
  0x91   :  { %137 = vmatmul.f32.gmra.mxu1 %v290_v33 }
  0x99   :  { %140 = vmatmul.f32.gmra.mxu1 %v291_v34 }
  0x9f   :  { %v126_v35 = vpop.f32.mrf.mxu1 }
  0xf6   :  { %v129_v36 = vpop.f32.mrf.mxu1 }
  0xfe   :  { %v132_v37 = vpop.f32.mrf.mxu1 }
 0x106   :  { %v135_v38 = vpop.f32.mrf.mxu1 }
 0x107   :  { %v84_v21 = vpop.f32.mrf.mxu0 }
 0x108   :  { %v85_v23 = vadd.f32 %v84_v21, %v59_v20 }
 0x10e   :  { %v138_v43 = vpop.f32.mrf.mxu1 }
 0x10f   :  { %v86_v26 = vpop.f32.mrf.mxu0 }
 0x110   :  { %v87_v29 = vadd.f32 %v86_v26, %v64_v27 }
 0x116   :  { %v141_v45 = vpop.f32.mrf.mxu1 }
 0x117   :  { %163 = vmatpush.msra.mxu2 %v141_v45 }
 0x119   :  { %164 = vmatpush.msra.mxu2 %v138_v43 }
 0x11b   :  { %165 = vmatpush.msra.mxu2 %v135_v38 }
 0x11d   :  { %166 = vmatpush.msra.mxu2 %v132_v37 }
 0x11f   :  { %167 = vmatpush.msra.mxu2 %v129_v36 }
 0x121   :  { %168 = vmatpush.msra.mxu2 %v126_v35 }
 0x122   :  { %280 = vmatmul.msk.f32.vlgmr.msra.gmra.mxu2 %vm146_vm1, %v144_v46 }
 0x12a   :  { %281 = vmatmul.msk.f32.gmra.mxu2 %vm146_vm1, %v145_v47 }
 0x1a5   :  { %v170_v49 = vpop.f32.mrf.mxu2 }
 0x1a6   :  { %v176_v51 = vmul.f32 0.00390625, %v170_v49 }
 0x1a8   :  { %v190_v52 = vadd.f32 %v183_v50, %v176_v51 }
 0x1aa   :  { %v282_v53 = vmul.f32 -1.442695, %v190_v52 }
 0x1ac   :  { %301 = vpow2.f32 %v282_v53 }
 0x1ad   :  { %v173_v54 = vpop.f32.mrf.mxu2 }
 0x1ae   :  { %v177_v55 = vmul.f32 0.00390625, %v173_v54 }
 0x1b0   :  { %v191_v58 = vadd.f32 %v188_v57, %v177_v55 }
 0x1b2   :  { %v302_v59 = vpop.eup %301  ;;  %v283_v60 = vmul.f32 -1.442695, %v191_v58 }
 0x1b3   :  { %v198_v61 = vadd.f32 1.0, %v302_v59 }
 0x1b4   :  { %303 = vpow2.f32 %v283_v60 }
 0x1b5   :  { %305 = vrcp.f32 %v198_v61  ;;  %v211_v3 = vand.u32 2147483648, %v198_v61  ;;  %v209_v5 = vand.u32 2147483647, %v198_v61  ;;  %vm205_vm4 = vweird.f32 %v198_v61 }
 0x1b7   :  { %v212_v8 = vor.u32 1.1754944e-38, %v211_v3  ;;  %vm210_vm7 = vcmp.eq.f32.partialorder %v209_v5, 8.507059e+37 }
 0x1ba   :  { %v304_v62 = vpop.eup %303 }
 0x1bb   :  { %v306_v63 = vpop.eup %305  ;;  %v199_v0 = vadd.f32 1.0, %v304_v62 }
 0x1bc   :  { %v201_v1 = vmul.f32 %v306_v63, %v198_v61  ;;  %vm206_vm3 = vweird.f32 %v306_v63 }
 0x1bd   :  { %307 = vrcp.f32 %v199_v0  ;;  %vm207_vm5 = vmor %vm205_vm4, %vm206_vm3  ;;  %v226_v13 = vand.u32 2147483648, %v199_v0  ;;  %v224_v15 = vand.u32 2147483647, %v199_v0  ;;  %vm220_vm9 = vweird.f32 %v199_v0 }
 0x1be   :  { %v202_v2 = vsub.f32 1.0, %v201_v1 }
 0x1bf   :  { %v227_v17 = vor.u32 1.1754944e-38, %v226_v13  ;;  %vm225_vm11 = vcmp.eq.f32.partialorder %v224_v15, 8.507059e+37 }
 0x1c0   :  { %v203_v4 = vmul.f32 %v306_v63, %v202_v2 }
 0x1c2   :  { %v204_v6 = vadd.f32 %v306_v63, %v203_v4 }
 0x1c3   :  { %v308_v7 = vpop.eup %307 }
 0x1c4   :  { %v208_v9 = vsel %vm207_vm5, %v306_v63, %v204_v6  ;;  %v216_v10 = vmul.f32 %v308_v7, %v199_v0  ;;  %vm221_vm8 = vweird.f32 %v308_v7 }
 0x1c5   :  { %v213_v11 = vsel %vm210_vm7, %v212_v8, %v208_v9  ;;  %vm222_vm10 = vmor %vm220_vm9, %vm221_vm8 }
 0x1c6   :  { %285 = vmatmul.msk.f32.vlgmr.msra.gmra.mxu3 %vm231_vm6, %v213_v11  ;;  %v217_v12 = vsub.f32 1.0, %v216_v10 }
 0x1c8   :  { %v218_v14 = vmul.f32 %v308_v7, %v217_v12 }
 0x1ca   :  { %v219_v16 = vadd.f32 %v308_v7, %v218_v14 }
 0x1cc   :  { %v223_v18 = vsel %vm222_vm10, %v308_v7, %v219_v16 }
 0x1cd   :  { %v228_v19 = vsel %vm225_vm11, %v227_v17, %v223_v18 }
 0x1ce   :  { %286 = vmatmul.msk.f32.gmra.mxu3 %vm231_vm6, %v228_v19 }
 0x249   :  { %v259_v22 = vpop.f32.mrf.mxu3 }
 0x24a   :  { %v265_v24 = vmul.f32 %v290_v33, %v259_v22 }
 0x24c   :  { %v267_v25 = vadd.f32 %v265_v24, %v85_v23 }
 0x24e   :  { %269 = vst [vmem:[%s482_s9] sm:$0xff] %v267_v25 }
 0x251   :  { %v262_v28 = vpop.f32.mrf.mxu3 }
 0x252   :  { %v266_v30 = vmul.f32 %v291_v34, %v262_v28 }
 0x254   :  { %v268_v31 = vadd.f32 %v266_v30, %v87_v29 }
 0x256   :  { %270 = vst [vmem:[%s482_s9 + $0x8] sm:$0xff] %v268_v31 }

</bundles_post_ra>
